<compile_context>
chip_gen: v6e
topology: v6e:2x2x1
jax: 0.10.0
libtpu: 0.0.40
codegen_flags: <defaults>
</compile_context>

<pallas_src>
import functools
import math

import jax
import jax.numpy as jnp
from jax.experimental import pallas as pl
from jax.experimental.pallas import tpu as pltpu

# Model dimensions (match the PyTorch module defaults; CNN requires 64x64 images
# so that 256*4*4 == fc fan-in).
LATENT_DIM = 32
HIDDEN_DIM = 128
FEATURE_DIM = 256
ACTION_DIM = 6
IMG_HW = 64
TB_BLOCK = 32  # timesteps per recurrent grid step


def _round_up(x, m):
    return ((x + m - 1) // m) * m


# ---------------------------------------------------------------------------
# Generic fused matmul + bias (+ReLU) Pallas kernel, K-tiled with f32
# accumulation (used for conv-as-im2col, the encoder FC layer and the hoisted
# recurrence precomputes). When the output dtype is f32 it accumulates
# directly into the resident output block (no scratch); otherwise it uses an
# f32 VMEM accumulator and casts at the final store.
# ---------------------------------------------------------------------------
def _linear_kernel(x_ref, w_ref, b_ref, o_ref, *acc, relu, n_k):
    acc_ref = acc[0] if acc else o_ref
    k = pl.program_id(1)

    @pl.when(k == 0)
    def _init():
        acc_ref[...] = jnp.zeros_like(acc_ref)

    acc_ref[...] += jnp.dot(x_ref[...], w_ref[...],
                            preferred_element_type=jnp.float32)

    @pl.when(k == n_k - 1)
    def _finalize():
        y = acc_ref[...].astype(jnp.float32) + b_ref[...]
        if relu:
            y = jnp.maximum(y, 0.0)
        o_ref[...] = y.astype(o_ref.dtype)


def pallas_linear(x, w, b, relu=False, out_dtype=jnp.float32,
                  keep_padded_n=False):
    """y = x @ w + b (optionally ReLU). f32 accumulation, `out_dtype` store.

    Output channels are zero-padded to a multiple of 128 lanes; if
    `keep_padded_n` the padded width is returned (lane-dense pass-through).
    """
    M, K = x.shape
    K2, N = w.shape
    assert K == K2
    b = jnp.asarray(b).reshape(-1)
    assert b.shape[0] == N

    # Pad output channels to a lane-dense multiple of 128 (unmasked stores).
    n_pad = _round_up(N, 128)
    if n_pad != N:
        w = jnp.pad(w, ((0, 0), (0, n_pad - N)))
        b = jnp.pad(b, (0, n_pad - N))
    b = b.astype(jnp.float32).reshape(1, n_pad)

    # K tiling: up to 2048 per step (fewer grid-step overheads / acc passes).
    if K <= 2048:
        tk = K
    else:
        tk = None
        for cand in (2048, 1024, 512, 256, 128):
            if K % cand == 0:
                tk = cand
                break
        if tk is None:  # awkward K: pad with zero columns/rows
            tk = 2048
            k_pad = _round_up(K, tk)
            x = jnp.pad(x, ((0, 0), (0, k_pad - K)))
            w = jnp.pad(w, ((0, k_pad - K), (0, 0)))
            K = k_pad
    n_k = K // tk

    # M tiling: cap at 512 rows, pad M up to a clean multiple (no degenerate
    # or VMEM-oversized fallback tiles).
    tm = _round_up(M, 8) if M <= 512 else 512
    m_pad = _round_up(M, tm)
    if m_pad != M:
        x = jnp.pad(x, ((0, m_pad - M), (0, 0)))

    out_is_f32 = jnp.dtype(out_dtype) == jnp.dtype(jnp.float32)
    scratch = [] if out_is_f32 else [pltpu.VMEM((tm, n_pad), jnp.float32)]

    out = pl.pallas_call(
        functools.partial(_linear_kernel, relu=relu, n_k=n_k),
        out_shape=jax.ShapeDtypeStruct((m_pad, n_pad), out_dtype),
        grid_spec=pltpu.PrefetchScalarGridSpec(
            num_scalar_prefetch=0,
            grid=(m_pad // tm, n_k),
            in_specs=[
                pl.BlockSpec((tm, tk), lambda i, k: (i, k)),
                pl.BlockSpec((tk, n_pad), lambda i, k: (k, 0)),
                pl.BlockSpec((1, n_pad), lambda i, k: (0, 0)),
            ],
            out_specs=pl.BlockSpec((tm, n_pad), lambda i, k: (i, 0)),
            scratch_shapes=scratch,
        ),
        compiler_params=pltpu.CompilerParams(
            dimension_semantics=("parallel", "arbitrary"),
            vmem_limit_bytes=32 * 1024 * 1024),
    )(x, w, b)

    if m_pad != M:
        out = out[:M]
    if n_pad != N and not keep_padded_n:
        out = out[:, :N]
    return out


# ---------------------------------------------------------------------------
# Conv2d(k=4, s=2, p=1) + ReLU, via im2col (XLA glue) + Pallas matmul.
# Stays NHWC end-to-end; taps stacked on a trailing axis (no big activation
# transpose); input channels may be lane-padded (zero weight rows match).
# ---------------------------------------------------------------------------
def conv2d_relu_nhwc(x, wmat, b, k=4, stride=2, pad=1, out_dtype=jnp.bfloat16):
    # x: (N, H, W, Cp) NHWC bf16 (Cp possibly lane-padded)
    # wmat: (k*k*Cp, Cout) matmul-form weights (tap-major, channel-minor rows)
    N, H, W, Cp = x.shape
    kk_cp, cout = wmat.shape
    assert kk_cp == k * k * Cp
    Ho = (H + 2 * pad - k) // stride + 1
    Wo = (W + 2 * pad - k) // stride + 1
    xp = jnp.pad(x, ((0, 0), (pad, pad), (pad, pad), (0, 0)))
    cols = []
    for kh in range(k):
        for kw in range(k):
            cols.append(
                xp[:, kh:kh + stride * Ho:stride, kw:kw + stride * Wo:stride, :])
    patches = jnp.stack(cols, axis=3)                    # (N, Ho, Wo, k*k, Cp)
    patches = patches.reshape(N * Ho * Wo, k * k * Cp)   # bf16, no 6-D transpose
    y = pallas_linear(patches, wmat, b, relu=True, out_dtype=out_dtype,
                      keep_padded_n=True)                # (M, cout_pad)
    return y.reshape(N, Ho, Wo, y.shape[1])              # NHWC, lane-padded Cout


def cnn_encoder(x_nchw, prep):
    # x: (N, 3, 64, 64) NCHW f32 -> (N, FEATURE_DIM) f32
    x = jnp.transpose(x_nchw.astype(jnp.bfloat16), (0, 2, 3, 1))  # NHWC bf16
    for i in range(4):
        x = conv2d_relu_nhwc(x, prep[f"conv{i}_wmat"], prep[f"conv{i}_b"])
    N = x.shape[0]
    x = x.reshape(N, -1)  # NHWC flatten; fc weight rows already permuted to match
    return pallas_linear(x, prep["fc_w_nhwc"], prep["fc_b"], relu=False,
                         out_dtype=jnp.float32)


# ---------------------------------------------------------------------------
# Recurrent RSSM kernel: GRUCell + fused prior/posterior head, Tb timesteps per
# grid step, h/z carried across grid steps in VMEM scratch, optional batch
# shards on a leading "parallel" grid axis (v7x megacore).
#
# Per-step streamed inputs (state-independent matmuls hoisted out of the loop):
#   gia[t] = a_t @ W_ih_a + b_ih                                  (B, 3*Hd)
#   fe[t]  = [ f_t @ W_post_f + b_post | eps_t | 0 ]              (B, 128)
# In-kernel per-step matmuls: z@W_ih_z, h@W_hh, h_new@[W_prior|W_post_h].
# ---------------------------------------------------------------------------
def _rssm_kernel(gia_ref, fe_ref, b_prior_ref,
                 w_ih_z_ref, w_hh_ref, b_hh_ref, w_heads_ref,
                 heads_ref, h_seq_ref,
                 h_scr, z_scr, *, hidden_dim, latent_dim, tb):
    @pl.when(pl.program_id(1) == 0)
    def _():
        h_scr[...] = jnp.zeros_like(h_scr)
        z_scr[...] = jnp.zeros_like(z_scr)

    Hd, L = hidden_dim, latent_dim
    w_ih_z = w_ih_z_ref[...]
    w_hh = w_hh_ref[...]
    b_hh = b_hh_ref[...]
    w_heads = w_heads_ref[...]
    b_prior = b_prior_ref[...]

    h = h_scr[...]   # (Bs, Hd)
    z = z_scr[...]   # (Bs, L)

    for i in range(tb):  # static unroll over the time block
        gi = jnp.dot(z, w_ih_z, preferred_element_type=jnp.float32) + gia_ref[i]
        gh = jnp.dot(h, w_hh, preferred_element_type=jnp.float32) + b_hh
        r = jax.nn.sigmoid(gi[:, 0:Hd] + gh[:, 0:Hd])
        u = jax.nn.sigmoid(gi[:, Hd:2 * Hd] + gh[:, Hd:2 * Hd])
        n = jnp.tanh(gi[:, 2 * Hd:3 * Hd] + r * gh[:, 2 * Hd:3 * Hd])
        h = (1.0 - u) * n + u * h

        fe = fe_ref[i]                                   # (Bs, 128)
        raw = jnp.dot(h, w_heads, preferred_element_type=jnp.float32)  # (Bs, 4L)
        prior_part = raw[:, 0:2 * L] + b_prior           # broadcast (1, 2L)
        post_part = raw[:, 2 * L:4 * L] + fe[:, 0:2 * L]
        heads = jnp.concatenate([prior_part, post_part], axis=-1)  # (Bs, 4L)

        mu_q = heads[:, 2 * L:3 * L]
        lv_q = heads[:, 3 * L:4 * L]
        z = mu_q + jnp.exp(0.5 * lv_q) * fe[:, 2 * L:3 * L]   # reparam sample

        heads_ref[i] = heads
        h_seq_ref[i] = h

    h_scr[...] = h
    z_scr[...] = z


def rssm_forward(states, actions, prep, key):
    """states: (B, T, 3, 64, 64) float32 ; actions: (B, T, A) float32."""
    B, T = states.shape[:2]
    A = actions.shape[-1]
    L, Hd = LATENT_DIM, HIDDEN_DIM

    # Encoder applied to every frame (independent of the recurrence).
    frames = states.reshape(B * T, *states.shape[2:])
    feats_flat = cnn_encoder(frames, prep)                     # (B*T, Fd) f32

    # --- Hoisted state-independent precomputes (one big matmul each) ---
    acts_flat = actions.reshape(B * T, A)
    gi_a = pallas_linear(acts_flat, prep["w_ih_a"], prep["b_ih"])      # (B*T, 3Hd)
    post_f = pallas_linear(feats_flat, prep["w_post_f"], prep["b_post"],
                           keep_padded_n=True)                         # (B*T, 128), lanes 2L: zeros

    # TODO(synk): torch.randn_like draws inside the loop; here eps is drawn
    # host-side with a JAX key (same distribution, different RNG stream).
    eps_bt = jax.random.normal(key, (B * T, L), jnp.float32)
    fe_slab = post_f.at[:, 2 * L:3 * L].set(eps_bt)                    # (B*T, 128)

    to_tbd = lambda x: jnp.transpose(x.reshape(B, T, x.shape[-1]), (1, 0, 2))
    gi_a_seq = to_tbd(gi_a)          # (T, B, 3Hd)
    fe_seq = to_tbd(fe_slab)         # (T, B, 128)

    # Block the time axis (Tb steps per grid step) and pad batch sublanes.
    Tb = min(TB_BLOCK, T)
    T_pad = _round_up(T, Tb)
    B_pad = _round_up(max(B, 8), 8)
    if B_pad >= 16:                  # allow 2 batch shards (v7x megacore)
        B_pad = _round_up(B_pad, 16)
        n_b = 2
    else:
        n_b = 1
    Bs = B_pad // n_b

    def pad_tb(x):
        return jnp.pad(x, ((0, T_pad - T), (0, B_pad - B), (0, 0)))

    gi_a_seq_p = pad_tb(gi_a_seq)
    fe_seq_p = pad_tb(fe_seq)

    def seq_spec(d):
        return pl.BlockSpec((Tb, Bs, d), lambda b, t: (t, b, 0))

    def w_spec(shape):
        return pl.BlockSpec(shape, lambda b, t: (0, 0))

    kernel = functools.partial(_rssm_kernel, hidden_dim=Hd, latent_dim=L, tb=Tb)
    heads_seq, h_seq = pl.pallas_call(
        kernel,
        out_shape=(jax.ShapeDtypeStruct((T_pad, B_pad, 4 * L), jnp.float32),
                   jax.ShapeDtypeStruct((T_pad, B_pad, Hd), jnp.float32)),
        grid_spec=pltpu.PrefetchScalarGridSpec(
            num_scalar_prefetch=0,
            grid=(n_b, T_pad // Tb),
            in_specs=[
                seq_spec(3 * Hd), seq_spec(4 * L),
                w_spec(prep["b_prior"].shape),
                w_spec(prep["w_ih_z"].shape),
                w_spec(prep["w_hh"].shape),
                w_spec(prep["b_hh"].shape),
                w_spec(prep["w_heads"].shape),
            ],
            out_specs=[seq_spec(4 * L), seq_spec(Hd)],
            scratch_shapes=[pltpu.VMEM((Bs, Hd), jnp.float32),
                            pltpu.VMEM((Bs, L), jnp.float32)],
        ),
        compiler_params=pltpu.CompilerParams(
            dimension_semantics=("parallel", "arbitrary")),
    )(gi_a_seq_p, fe_seq_p, prep["b_prior"],
      prep["w_ih_z"], prep["w_hh"], prep["b_hh"], prep["w_heads"])

    heads_bt = jnp.transpose(heads_seq[:T, :B], (1, 0, 2))   # (B, T, 4L)
    h_bt = jnp.transpose(h_seq[:T, :B], (1, 0, 2))           # (B, T, Hd)

    prior_mu = heads_bt[..., 0:L]
    prior_lv = heads_bt[..., L:2 * L]
    post_mu = heads_bt[..., 2 * L:3 * L]
    post_lv = heads_bt[..., 3 * L:4 * L]
    # z recomputed from the same (mu, logvar, eps) used inside the kernel.
    z_bt = post_mu + jnp.exp(0.5 * post_lv) * eps_bt.reshape(B, T, L)

    return prior_mu, prior_lv, post_mu, post_lv, h_bt, z_bt


# ---------------------------------------------------------------------------
# Deterministic parameter init (PyTorch-style U(-1/sqrt(fan_in), +1/sqrt(fan_in)))
# and one-time derived-weight preparation (matmul-form conv weights, padded
# channel pass-through rows, NHWC fc-row permute, fused head weights).
# ---------------------------------------------------------------------------
def init_params(key, action_dim, latent_dim, hidden_dim, feature_dim):
    params = {}
    keys = iter(jax.random.split(key, 32))

    def uni(shape, bound):
        return jax.random.uniform(next(keys), shape, jnp.float32, -bound, bound)

    # CNN encoder (torch layout: (Cout, Cin, k, k))
    for i, (cin, cout) in enumerate([(3, 32), (32, 64), (64, 128), (128, 256)]):
        bound = 1.0 / math.sqrt(cin * 4 * 4)
        params[f"conv{i}_w"] = uni((cout, cin, 4, 4), bound)
        params[f"conv{i}_b"] = uni((cout,), bound)
    bound = 1.0 / math.sqrt(256 * 4 * 4)
    params["fc_w"] = uni((256 * 4 * 4, feature_dim), bound)   # (CHW-flatten, Fd)
    params["fc_b"] = uni((feature_dim,), bound)

    # GRUCell(latent+action -> hidden), stored pre-transposed (in, 3H) and split
    bound = 1.0 / math.sqrt(hidden_dim)
    params["w_ih_z"] = uni((latent_dim, 3 * hidden_dim), bound)
    params["w_ih_a"] = uni((action_dim, 3 * hidden_dim), bound)
    params["b_ih"] = uni((1, 3 * hidden_dim), bound)
    params["w_hh"] = uni((hidden_dim, 3 * hidden_dim), bound)
    params["b_hh"] = uni((1, 3 * hidden_dim), bound)

    # prior_net: Linear(hidden, 2*latent)
    bound = 1.0 / math.sqrt(hidden_dim)
    params["w_prior"] = uni((hidden_dim, 2 * latent_dim), bound)
    params["b_prior"] = uni((1, 2 * latent_dim), bound)

    # posterior_net: Linear(hidden+feature, 2*latent), split for concat-free matmul
    bound = 1.0 / math.sqrt(hidden_dim + feature_dim)
    params["w_post_h"] = uni((hidden_dim, 2 * latent_dim), bound)
    params["w_post_f"] = uni((feature_dim, 2 * latent_dim), bound)
    params["b_post"] = uni((1, 2 * latent_dim), bound)
    return params


def prepare_params(params):
    """One-time weight re-layouts (would be done at load time in production)."""
    prep = {}
    k = 4
    # conv chain: input channels of layer i are the (lane-padded) output
    # channels of layer i-1; pad the weight's Cin rows with zeros to match.
    cp_in = 3
    for i in range(4):
        w = params[f"conv{i}_w"]                     # (Cout, Cin, k, k)
        cout, cin = w.shape[0], w.shape[1]
        wk = jnp.transpose(w, (2, 3, 1, 0))          # (kh, kw, Cin, Cout)
        if cp_in > cin:
            wk = jnp.pad(wk, ((0, 0), (0, 0), (0, cp_in - cin), (0, 0)))
        prep[f"conv{i}_wmat"] = wk.reshape(k * k * cp_in, cout).astype(jnp.bfloat16)
        prep[f"conv{i}_b"] = params[f"conv{i}_b"]
        cp_in = _round_up(cout, 128)                 # padded pass-through width

    # fc: permute rows from NCHW-flatten (c,h,w) to NHWC-flatten (h,w,c) order.
    fd = params["fc_w"].shape[1]
    prep["fc_w_nhwc"] = (params["fc_w"].reshape(256, 4, 4, fd)
                         .transpose(1, 2, 0, 3)
                         .reshape(256 * 4 * 4, fd).astype(jnp.bfloat16))
    prep["fc_b"] = params["fc_b"]

    # recurrence weights (kept f32) + fused prior/posterior-h head.
    for name in ("w_ih_z", "w_ih_a", "b_ih", "w_hh", "b_hh",
                 "b_prior", "w_post_f", "b_post"):
        prep[name] = params[name]
    prep["w_heads"] = jnp.concatenate(
        [params["w_prior"], params["w_post_h"]], axis=1)       # (Hd, 4L)
    return prep


if __name__ == "__main__":
    B, T = 2, 3
    key = jax.random.PRNGKey(0)
    k_params, k_states, k_actions, k_eps = jax.random.split(key, 4)

    params = init_params(k_params, ACTION_DIM, LATENT_DIM, HIDDEN_DIM, FEATURE_DIM)
    prep = prepare_params(params)

    # "states" are rendered observations fed to the CNN encoder: (B, T, 3, 64, 64)
    states = jax.random.normal(k_states, (B, T, 3, IMG_HW, IMG_HW), jnp.float32)
    actions = jax.random.normal(k_actions, (B, T, ACTION_DIM), jnp.float32)

    outs = rssm_forward(states, actions, prep, k_eps)
    outs = jax.block_until_ready(outs)
    prior_mu, prior_logvar, post_mu, post_logvar, h_seq, z_seq = outs

    assert prior_mu.shape == (B, T, LATENT_DIM)
    assert prior_logvar.shape == (B, T, LATENT_DIM)
    assert post_mu.shape == (B, T, LATENT_DIM)
    assert post_logvar.shape == (B, T, LATENT_DIM)
    assert h_seq.shape == (B, T, HIDDEN_DIM)
    assert z_seq.shape == (B, T, LATENT_DIM)
    for o in outs:
        assert bool(jnp.all(jnp.isfinite(o)))

    print("KERNEL_OK")
</pallas_src>

<mosaic_0001>
module attributes {stable_mosaic.version = 11 : i64} {
  func.func @_linear_kernel(%arg0: i32, %arg1: i32, %arg2: memref<512x48xbf16, #tpu.memory_space<vmem>>, %arg3: memref<48x128xbf16, #tpu.memory_space<vmem>>, %arg4: memref<1x128xf32, #tpu.memory_space<vmem>>, %arg5: memref<512x128xbf16, #tpu.memory_space<vmem>>, %arg6: memref<512x128xf32, #tpu.memory_space<vmem>>) attributes {dimension_semantics = [#tpu.dimension_semantics<parallel>, #tpu.dimension_semantics<arbitrary>], iteration_bounds = array<i64: 12, 1>, scalar_prefetch = 0 : i64, scratch_operands = 1 : i64, tpu.core_type = #tpu.core_type<tc>, window_params = [{transform_indices = @transform_0, window_bounds = array<i64: 512, 48>}, {transform_indices = @transform_1, window_bounds = array<i64: 48, 128>}, {pipeline_mode = #tpu.pipeline_mode<synchronous>, transform_indices = @transform_2, window_bounds = array<i64: 1, 128>}, {transform_indices = @transform_3, window_bounds = array<i64: 512, 128>}]} {
    %c0_i32 = arith.constant 0 : i32
    %0 = arith.cmpi eq, %arg1, %c0_i32 : i32
    %1 = arith.extui %0 : i1 to i32
    %c0_i32_0 = arith.constant 0 : i32
    %2 = arith.cmpi ne, %1, %c0_i32_0 : i32
    scf.if %2 {
      %cst_10 = arith.constant 0.000000e+00 : f32
      %12 = vector.broadcast %cst_10 : f32 to vector<512x128xf32>
      %c0_11 = arith.constant 0 : index
      %c0_12 = arith.constant 0 : index
      %13 = vector.load %arg6[%c0_11, %c0_12] : memref<512x128xf32, #tpu.memory_space<vmem>>, vector<512x128xf32>
      tpu.vector_store %arg6[%c0_11, %c0_12], %12 {strides = array<i32>} : memref<512x128xf32, #tpu.memory_space<vmem>>, vector<512x128xf32>,
    } else {
    }
    %c0 = arith.constant 0 : index
    %c0_1 = arith.constant 0 : index
    %3 = vector.load %arg6[%c0, %c0_1] : memref<512x128xf32, #tpu.memory_space<vmem>>, vector<512x128xf32>
    %c0_2 = arith.constant 0 : index
    %c0_3 = arith.constant 0 : index
    %4 = vector.load %arg2[%c0_2, %c0_3] : memref<512x48xbf16, #tpu.memory_space<vmem>>, vector<512x48xbf16>
    %c0_4 = arith.constant 0 : index
    %c0_5 = arith.constant 0 : index
    %5 = vector.load %arg3[%c0_4, %c0_5] : memref<48x128xbf16, #tpu.memory_space<vmem>>, vector<48x128xbf16>
    %cst = arith.constant dense<0.000000e+00> : vector<512x128xf32>
    %6 = tpu.matmul %4, %5, %cst {dimension_numbers = #tpu.dot_dimension_numbers<[1], [0], [0], [1], [0, 0, 1, 1], [], []>} : vector<512x48xbf16>, vector<48x128xbf16>, vector<512x128xf32> -> vector<512x128xf32>
    %7 = arith.addf %3, %6 : vector<512x128xf32>
    %c0_6 = arith.constant 0 : index
    %c0_7 = arith.constant 0 : index
    %8 = vector.load %arg6[%c0_6, %c0_7] : memref<512x128xf32, #tpu.memory_space<vmem>>, vector<512x128xf32>
    tpu.vector_store %arg6[%c0_6, %c0_7], %7 {strides = array<i32>} : memref<512x128xf32, #tpu.memory_space<vmem>>, vector<512x128xf32>,
    %c0_i32_8 = arith.constant 0 : i32
    %9 = arith.cmpi eq, %arg1, %c0_i32_8 : i32
    %10 = arith.extui %9 : i1 to i32
    %c0_i32_9 = arith.constant 0 : i32
    %11 = arith.cmpi ne, %10, %c0_i32_9 : i32
    scf.if %11 {
      %c0_10 = arith.constant 0 : index
      %c0_11 = arith.constant 0 : index
      %12 = vector.load %arg6[%c0_10, %c0_11] : memref<512x128xf32, #tpu.memory_space<vmem>>, vector<512x128xf32>
      %c0_12 = arith.constant 0 : index
      %c0_13 = arith.constant 0 : index
      %13 = vector.load %arg4[%c0_12, %c0_13] : memref<1x128xf32, #tpu.memory_space<vmem>>, vector<1x128xf32>
      %14 = vector.broadcast %13 : vector<1x128xf32> to vector<512x128xf32>
      %15 = arith.addf %12, %14 : vector<512x128xf32>
      %cst_14 = arith.constant 0.000000e+00 : f32
      %16 = vector.broadcast %cst_14 : f32 to vector<512x128xf32>
      %17 = arith.maximumf %15, %16 : vector<512x128xf32>
      %18 = arith.truncf %17 : vector<512x128xf32> to vector<512x128xbf16>
      %c0_15 = arith.constant 0 : index
      %c0_16 = arith.constant 0 : index
      %19 = vector.load %arg5[%c0_15, %c0_16] : memref<512x128xbf16, #tpu.memory_space<vmem>>, vector<512x128xbf16>
      tpu.vector_store %arg5[%c0_15, %c0_16], %18 {strides = array<i32>} : memref<512x128xbf16, #tpu.memory_space<vmem>>, vector<512x128xbf16>,
    } else {
    }
    return
  }
  func.func @transform_0(%arg0: i32, %arg1: i32) -> (i32, i32) {
    %c0_i32 = arith.constant 0 : i32
    return %arg0, %arg1 : i32, i32
  }
  func.func @transform_1(%arg0: i32, %arg1: i32) -> (i32, i32) {
    %c0_i32 = arith.constant 0 : i32
    %c0_i32_0 = arith.constant 0 : i32
    return %arg1, %c0_i32 : i32, i32
  }
  func.func @transform_2(%arg0: i32, %arg1: i32) -> (i32, i32) {
    %c0_i32 = arith.constant 0 : i32
    %c0_i32_0 = arith.constant 0 : i32
    %c0_i32_1 = arith.constant 0 : i32
    return %c0_i32, %c0_i32_0 : i32, i32
  }
  func.func @transform_3(%arg0: i32, %arg1: i32) -> (i32, i32) {
    %c0_i32 = arith.constant 0 : i32
    %c0_i32_0 = arith.constant 0 : i32
    return %arg0, %c0_i32 : i32, i32
  }
}

</mosaic_0001>

<bundles_post_ra>
// kernel: tpu_custom_call.1
= control target key start
LH: loop header
LB: loop body
LE: loop exit
PB: predicated region body
PF: predicated region fallthrough
CT: control target
= control target key end

     0   :  { %8 = vsyncpa [#allocation4], 0  ;;  %s2738_s0 = inlined_call_operand.vmem [shape: bf16[6144,48], index: 0, kind: input, shape index: {}]   ;;  %s2739_s1 = inlined_call_operand.vmem [shape: bf16[48,128], index: 1, kind: input, shape index: {}]   ;;  %s2740_s2 = inlined_call_operand.vmem [shape: f32[1,128], index: 2, kind: input, shape index: {}]   ;;  %s2741_s3 = inlined_call_operand.hbm [shape: bf16[6144,128], index: 3, kind: output, shape index: {}]  }
   0x1   :  { %10 = vsyncpa [#allocation4 + $0x1], 0  ;;  %s2442_s12 = smov 0   ;;  %s2444_s13 = smov 0  }
   0x2   :  { %s2446_s14 = smov 0   ;;  %s2448_s15 = smov 0  }
   0x3   :  { %s2450_s16 = smov 0   ;;  %s2452_s17 = smov 0  }
   0x4 LB: > { %s1736_s18 = sadd.s32 4294967295, %s2417_s17   ;;  %s1737_s19 = sadd.s32 4294967294, %s2417_s17   ;;  %s2417_s17 = sphi %s2452_s17, %s16_s17   ;;  %s2413_s16 = sphi %s2450_s16, %s2748_s16   ;;  %s2409_s15 = sphi %s2448_s15, %s2747_s15   ;;  %s2405_s14 = sphi %s2446_s14, %s2746_s14   ;;  %s2401_s13 = sphi %s2444_s13, %s2745_s13   ;;  %s2397_s12 = sphi %s2442_s12, %s2744_s12  }
   0x5   : > { %s28_s20 = sadd.s32 1, %s2413_s16  ;;  %s110_s21 = sadd.s32 1, %s2405_s14 }
   0x6   : > { %p30_p0 = scmp.ge.s32.totalorder %s28_s20, 12  ;;  %p120_p1 = scmp.ne.s32.totalorder %s2405_s14, %s2401_s13 }
   0x7   : > { %p121_p2 = scmp.eq.s32.totalorder %s1736_s18, 11  ;;  %p126_p3 = scmp.ne.s32.totalorder %s2401_s13, %s2397_s12 }
   0x8   : > { %s2750_s20 = smov (%p30_p0, %s28_s20), 0  ;;  %p127_p5 = scmp.eq.s32.totalorder %s1737_s19, 11 }
   0x9   : > { %p2482_p4 = por %p121_p2, %p120_p1  ;;  %s107_s23 = ssub.s32 %s2413_s16, %s2750_s20 }
   0xa   : > { %p1741_p6 = scmp.ge.s32.totalorder %s2417_s17, 1  ;;  %p108_p7 = scmp.eq.s32.totalorder %s107_s23, 0 }
   0xb   : > { %p2489_p8 = por %p127_p5, %p126_p3  ;;  %p169_p9 = scmp.lt.s32.totalorder %s2417_s17, 13 }
   0xc   : > { %s2495_s25 = scalar_select %p108_p7, %s2405_s14, %s110_s21  }
   0xd   : > { %p170_p10 = pnand %p1741_p6, %p169_p9 }
   0xe   : > { %s1743_s28 = sshll.u32 (!%p170_p10), %s2409_s15, 6  ;;  %s198_s18 = sand.u32 (!%p170_p10), 1, %s2401_s13  }
   0xf   : > { %173 = sbr.rel (%p170_p10) target bundleno = 308 (0x134), region = 32  ;;  %p202_p11 = scmp.lt.s32.totalorder (!%p170_p10), %s1743_s28, 767 }
  0x10   : > { %s1742_s19 = sshll.u32 (!%p170_p10), %s198_s18, 8  ;;  %s1946_s23 = sshll.u32 (!%p170_p10), %s2409_s15, 12 }
  0x11   : > { %s2594_s21 = scalar_lea.vmem (!%p170_p10), [#allocation3], %s1742_s19  ;;  %s2683_s29 = scalar_lea.hbm (!%p170_p10), %s2741_s3, %s1946_s23 }
  0x12   : > { %s1648_s26 = sshll.u32 (!%p170_p10), %s2594_s21, 4  ;;  %s2693_s15 = scalar_lea.sflag (!%p170_p10), [#allocation4], %s198_s18  ;;  %s2685_s26 = int_to_ptr.vmem [resolvable:$true] %s1648_s26 }
  0x13   : > { %s2341_s30 = scalar_lea.vmem (!%p170_p10), %s2685_s26, 4096  ;;  %s2419_s4 = smov (!%p170_p10), [#allocation3]  }
  0x14   : > { %v2306_v0 = vld [vmem:[%s2739_s1 + $0x10] sm:$0xff]   ;;  %v2307_v1 = vld [vmem:[%s2739_s1 + $0x8] sm:$0xff]   ;;  %s2752_s28 = smov (!%p202_p11, %s1743_s28), 767  ;;  %v2308_v2 = vld [vmem:[%s2739_s1] sm:$0xff]   ;;  %vm598_vm0 = vcmask 392192   ;;  %p2342_p12 = scmp.ne.s32.totalorder %s2685_s26, %s2341_s30 }
  0x15   : > { %2173 = vmatprep.subr.bf16.mxu0 %v2306_v0  ;;  %2243 = vmatprep.subr.bf16.mxu1 %v2306_v0  ;;  %s1744_s6 = sshll.u32 %s2752_s28, 2  ;;  %v2579_v35 = vld [vmem:[%s2740_s2] ss:$0 sm:$0xff]  ;;  %s2345_s5 = sshll.u32 %s2419_s4, 4  ;;  %s2346_s5 = int_to_ptr.vmem [resolvable:$false] %s2345_s5 }
  0x16   : > { %2174 = vmatpush3.bf16.msra.mxu0 %v2306_v0  ;;  %2246 = vmatpush3.bf16.msra.mxu1 %v2306_v0  ;;  %s2510_s9 = scalar_lea.vmem %s2738_s0, %s1744_s6  ;;  %p2343_p13 = pnand %p2342_p12, %p2482_p4 }
  0x17   : > { %2175 = vmatprep.subr.bf16.mxu0 %v2307_v1  ;;  %2244 = vmatprep.subr.bf16.mxu1 %v2307_v1  ;;  %v2309_v3 = vld [vmem:[%s2510_s9] sm:$0xff]   ;;  %v2311_v5 = vld [vmem:[%s2510_s9 + $0x8] sm:$0xff]   ;;  %v2313_v7 = vld [vmem:[%s2510_s9 + $0x10] sm:$0xff]   ;;  %s2347_s6 = scalar_lea.vmem %s2346_s5, 8192  ;;  %p2348_p1 = scmp.lt.s32.totalorder %s2685_s26, %s2346_s5 }
  0x18   : > { %v2310_v4 = vld [vmem:[%s2510_s9 + $0x80] sm:$0xff]   ;;  %2179 = vmatprep.mubr.msk.bf16.mxu0 %vm598_vm0, %v2309_v3  ;;  %v2312_v6 = vld [vmem:[%s2510_s9 + $0x88] sm:$0xff]   ;;  %v2314_v8 = vld [vmem:[%s2510_s9 + $0x90] sm:$0xff]   ;;  %p2344_p0 = pneg %p2343_p13  ;;  %p2349_p2 = scmp.lt.s32.totalorder %s2347_s6, %s2341_s30 }
  0x19   : > { %2211 = vmatprep.mubr.msk.bf16.mxu1 %vm598_vm0, %v2310_v4  ;;  %v2315_v9 = vld [vmem:[%s2510_s9 + $0x18] sm:$0xff]   ;;  %v2317_v11 = vld [vmem:[%s2510_s9 + $0x20] sm:$0xff]   ;;  %v2319_v13 = vld [vmem:[%s2510_s9 + $0x28] sm:$0xff]  }
  0x1a   : > { %2176 = vmatpush3.bf16.msra.mxu0 %v2307_v1  ;;  %2247 = vmatpush3.bf16.msra.mxu1 %v2307_v1  ;;  %v2316_v10 = vld [vmem:[%s2510_s9 + $0x98] sm:$0xff]   ;;  %v2318_v12 = vld [vmem:[%s2510_s9 + $0xa0] sm:$0xff]   ;;  %v2320_v14 = vld [vmem:[%s2510_s9 + $0xa8] sm:$0xff]   ;;  %p2350_p3 = por %p2349_p2, %p2348_p1 }
  0x1b   : > { %2177 = vmatprep.subr.bf16.mxu0 %v2308_v2  ;;  %2245 = vmatprep.subr.bf16.mxu1 %v2308_v2  ;;  %v2321_v15 = vld [vmem:[%s2510_s9 + $0x30] sm:$0xff]   ;;  %v2323_v17 = vld [vmem:[%s2510_s9 + $0x38] sm:$0xff]   ;;  %v2325_v19 = vld [vmem:[%s2510_s9 + $0x40] sm:$0xff]  }
  0x1c   : > { %v2322_v16 = vld [vmem:[%s2510_s9 + $0xb0] sm:$0xff]   ;;  %v2324_v18 = vld [vmem:[%s2510_s9 + $0xb8] sm:$0xff]   ;;  %v2326_v20 = vld [vmem:[%s2510_s9 + $0xc0] sm:$0xff]   ;;  %p2351_p5 = pnand %p2350_p3, %p2344_p0 }
  0x1d   : > { %v2327_v21 = vld [vmem:[%s2510_s9 + $0x48] sm:$0xff]   ;;  %v2329_v23 = vld [vmem:[%s2510_s9 + $0x50] sm:$0xff]   ;;  %v2331_v25 = vld [vmem:[%s2510_s9 + $0x58] sm:$0xff]  }
  0x1e   : > { %2178 = vmatpush3.bf16.msra.mxu0 %v2308_v2  ;;  %2248 = vmatpush3.bf16.msra.mxu1 %v2308_v2  ;;  %v2328_v22 = vld [vmem:[%s2510_s9 + $0xc8] sm:$0xff]   ;;  %v2330_v24 = vld [vmem:[%s2510_s9 + $0xd0] sm:$0xff]   ;;  %v2332_v26 = vld [vmem:[%s2510_s9 + $0xd8] sm:$0xff]  }
  0x1f   : > { %v2333_v27 = vld [vmem:[%s2510_s9 + $0x60] sm:$0xff]   ;;  %v2335_v29 = vld [vmem:[%s2510_s9 + $0x68] sm:$0xff]   ;;  %v2337_v31 = vld [vmem:[%s2510_s9 + $0x70] sm:$0xff]  }
  0x20   : > { %v2334_v28 = vld [vmem:[%s2510_s9 + $0xe0] sm:$0xff]   ;;  %v2336_v30 = vld [vmem:[%s2510_s9 + $0xe8] sm:$0xff]   ;;  %v2338_v32 = vld [vmem:[%s2510_s9 + $0xf0] sm:$0xff]  }
  0x21   : > { %2180 = vmatmul.mubr.msk.bf16.vlgmr.msra.gmra.mxu0 %vm598_vm0, %v2311_v5  ;;  %2212 = vmatmul.mubr.msk.bf16.vlgmr.msra.gmra.mxu1 %vm598_vm0, %v2312_v6  ;;  %v2339_v33 = vld [vmem:[%s2510_s9 + $0x78] sm:$0xff]  }
  0x22   : > { %2183 = vmatprep.mubr.msk.bf16.mxu0 %vm598_vm0, %v2313_v7  ;;  %2215 = vmatprep.mubr.msk.bf16.mxu1 %vm598_vm0, %v2314_v8  ;;  %v2340_v34 = vld [vmem:[%s2510_s9 + $0xf8] sm:$0xff]  }
  0x29   : > { %2184 = vmatmul.mubr.msk.bf16.gmra.mxu0 %vm598_vm0, %v2315_v9  ;;  %2216 = vmatmul.mubr.msk.bf16.gmra.mxu1 %vm598_vm0, %v2316_v10 }
  0x2a   : > { %2187 = vmatprep.mubr.msk.bf16.mxu0 %vm598_vm0, %v2317_v11  ;;  %2219 = vmatprep.mubr.msk.bf16.mxu1 %vm598_vm0, %v2318_v12 }
  0x31   : > { %2188 = vmatmul.mubr.msk.bf16.gmra.mxu0 %vm598_vm0, %v2319_v13  ;;  %2220 = vmatmul.mubr.msk.bf16.gmra.mxu1 %vm598_vm0, %v2320_v14 }
  0x32   : > { %2191 = vmatprep.mubr.msk.bf16.mxu0 %vm598_vm0, %v2321_v15  ;;  %2223 = vmatprep.mubr.msk.bf16.mxu1 %vm598_vm0, %v2322_v16 }
  0x39   : > { %2192 = vmatmul.mubr.msk.bf16.gmra.mxu0 %vm598_vm0, %v2323_v17  ;;  %2224 = vmatmul.mubr.msk.bf16.gmra.mxu1 %vm598_vm0, %v2324_v18 }
  0x3a   : > { %2195 = vmatprep.mubr.msk.bf16.mxu0 %vm598_vm0, %v2325_v19  ;;  %2227 = vmatprep.mubr.msk.bf16.mxu1 %vm598_vm0, %v2326_v20 }
  0x41   : > { %2196 = vmatmul.mubr.msk.bf16.gmra.mxu0 %vm598_vm0, %v2327_v21  ;;  %2228 = vmatmul.mubr.msk.bf16.gmra.mxu1 %vm598_vm0, %v2328_v22 }
  0x42   : > { %2199 = vmatprep.mubr.msk.bf16.mxu0 %vm598_vm0, %v2329_v23  ;;  %2231 = vmatprep.mubr.msk.bf16.mxu1 %vm598_vm0, %v2330_v24 }
  0x49   : > { %2200 = vmatmul.mubr.msk.bf16.gmra.mxu0 %vm598_vm0, %v2331_v25  ;;  %2232 = vmatmul.mubr.msk.bf16.gmra.mxu1 %vm598_vm0, %v2332_v26 }
  0x4a   : > { %2203 = vmatprep.mubr.msk.bf16.mxu0 %vm598_vm0, %v2333_v27  ;;  %2235 = vmatprep.mubr.msk.bf16.mxu1 %vm598_vm0, %v2334_v28 }
  0x51   : > { %2204 = vmatmul.mubr.msk.bf16.gmra.mxu0 %vm598_vm0, %v2335_v29  ;;  %2236 = vmatmul.mubr.msk.bf16.gmra.mxu1 %vm598_vm0, %v2336_v30 }
  0x52   : > { %2207 = vmatprep.mubr.msk.bf16.mxu0 %vm598_vm0, %v2337_v31  ;;  %2239 = vmatprep.mubr.msk.bf16.mxu1 %vm598_vm0, %v2338_v32 }
  0x59   : > { %2208 = vmatmul.mubr.msk.bf16.gmra.mxu0 %vm598_vm0, %v2339_v33  ;;  %2240 = vmatmul.mubr.msk.bf16.gmra.mxu1 %vm598_vm0, %v2340_v34 }
  0xe1   : > { %v2181_v36 = vpop.f32.mrf.mxu0  ;;  %v2213_v37 = vpop.f32.mrf.mxu1 }
  0xe2   : > { %v1188_v38 = vadd.f32 %v2181_v36, %v2579_v35  ;;  %v1220_v39 = vadd.f32 %v2213_v37, %v2579_v35 }
  0xe3   : > { %v729_v40 = vpop.f32.mrf.mxu0  ;;  %v857_v41 = vpop.f32.mrf.mxu1 }
  0xe4   : > { %v1186_v42 = vadd.f32 %v2579_v35, %v729_v40  ;;  %v1218_v43 = vadd.f32 %v2579_v35, %v857_v41  ;;  %v1252_v48 = vmax.f32 %v1188_v38, 0.0  ;;  %v1284_v49 = vmax.f32 %v1220_v39, 0.0 }
  0xe5   : > { %v2182_v44 = vpop.f32.mrf.mxu0  ;;  %v2214_v45 = vpop.f32.mrf.mxu1 }
  0xe6   : > { %v1189_v46 = vadd.f32 %v2182_v44, %v2579_v35  ;;  %v1221_v47 = vadd.f32 %v2214_v45, %v2579_v35  ;;  %v1250_v56 = vmax.f32 %v1186_v42, 0.0  ;;  %v1282_v57 = vmax.f32 %v1218_v43, 0.0 }
  0xe7   : > { %v732_v50 = vpop.f32.mrf.mxu0  ;;  %v860_v51 = vpop.f32.mrf.mxu1 }
  0xe8   : > { %v1253_v52 = vmax.f32 %v1189_v46, 0.0  ;;  %v1285_v53 = vmax.f32 %v1221_v47, 0.0  ;;  %v1187_v54 = vadd.f32 %v2579_v35, %v732_v50  ;;  %v1219_v55 = vadd.f32 %v2579_v35, %v860_v51 }
  0xe9   : > { %v2185_v58 = vpop.f32.mrf.mxu0  ;;  %v2217_v59 = vpop.f32.mrf.mxu1 }
  0xea   : > { %v1955_v60 = vpack.c.bf16 %v1253_v52, %v1252_v48  ;;  %v2035_v61 = vpack.c.bf16 %v1285_v53, %v1284_v49  ;;  %v1251_v62 = vmax.f32 %v1187_v54, 0.0  ;;  %v1283_v63 = vmax.f32 %v1219_v55, 0.0 }
  0xeb   : > { %v1192_v0 = vadd.f32 %v2185_v58, %v2579_v35  ;;  %v1224_v1 = vadd.f32 %v2217_v59, %v2579_v35  ;;  %v745_v2 = vpop.f32.mrf.mxu0  ;;  %v873_v3 = vpop.f32.mrf.mxu1 }
  0xec   : > { %2107 = vst [vmem:[%s2594_s21 + $0x8] sm:$0xff] %v1955_v60   ;;  %2123 = vst [vmem:[%s2594_s21 + $0x88] sm:$0xff] %v2035_v61   ;;  %v1950_v4 = vpack.c.bf16 %v1251_v62, %v1250_v56  ;;  %v2030_v5 = vpack.c.bf16 %v1283_v63, %v1282_v57  ;;  %v1190_v6 = vadd.f32 %v2579_v35, %v745_v2 }
  0xed   : > { %v1222_v7 = vadd.f32 %v2579_v35, %v873_v3  ;;  %v2186_v8 = vpop.f32.mrf.mxu0  ;;  %v2218_v9 = vpop.f32.mrf.mxu1  ;;  %v1256_v12 = vmax.f32 %v1192_v0, 0.0  ;;  %v1288_v13 = vmax.f32 %v1224_v1, 0.0 }
  0xee   : > { %1951 = vst [vmem:[%s2594_s21] sm:$0xff] %v1950_v4   ;;  %2122 = vst [vmem:[%s2594_s21 + $0x80] sm:$0xff] %v2030_v5   ;;  %v1193_v10 = vadd.f32 %v2186_v8, %v2579_v35  ;;  %v1225_v11 = vadd.f32 %v2218_v9, %v2579_v35  ;;  %v1254_v20 = vmax.f32 %v1190_v6, 0.0 }
  0xef   : > { %v748_v14 = vpop.f32.mrf.mxu0  ;;  %v876_v15 = vpop.f32.mrf.mxu1  ;;  %v1286_v21 = vmax.f32 %v1222_v7, 0.0 }
  0xf0   : > { %v1257_v16 = vmax.f32 %v1193_v10, 0.0  ;;  %v1289_v17 = vmax.f32 %v1225_v11, 0.0  ;;  %v1191_v18 = vadd.f32 %v2579_v35, %v748_v14  ;;  %v1223_v19 = vadd.f32 %v2579_v35, %v876_v15 }
  0xf1   : > { %v2189_v22 = vpop.f32.mrf.mxu0  ;;  %v2221_v23 = vpop.f32.mrf.mxu1 }
  0xf2   : > { %v1965_v24 = vpack.c.bf16 %v1257_v16, %v1256_v12  ;;  %v2045_v25 = vpack.c.bf16 %v1289_v17, %v1288_v13  ;;  %v1255_v26 = vmax.f32 %v1191_v18, 0.0  ;;  %v1287_v27 = vmax.f32 %v1223_v19, 0.0 }
  0xf3   : > { %v1196_v28 = vadd.f32 %v2189_v22, %v2579_v35  ;;  %v1228_v29 = vadd.f32 %v2221_v23, %v2579_v35  ;;  %v761_v30 = vpop.f32.mrf.mxu0  ;;  %v889_v31 = vpop.f32.mrf.mxu1 }
  0xf4   : > { %2109 = vst [vmem:[%s2594_s21 + $0x18] sm:$0xff] %v1965_v24   ;;  %2125 = vst [vmem:[%s2594_s21 + $0x98] sm:$0xff] %v2045_v25   ;;  %v1960_v32 = vpack.c.bf16 %v1255_v26, %v1254_v20  ;;  %v2040_v33 = vpack.c.bf16 %v1287_v27, %v1286_v21  ;;  %v1194_v34 = vadd.f32 %v2579_v35, %v761_v30 }
  0xf5   : > { %v1226_v36 = vadd.f32 %v2579_v35, %v889_v31  ;;  %v2190_v37 = vpop.f32.mrf.mxu0  ;;  %v2222_v38 = vpop.f32.mrf.mxu1  ;;  %v1260_v41 = vmax.f32 %v1196_v28, 0.0  ;;  %v1292_v42 = vmax.f32 %v1228_v29, 0.0 }
  0xf6   : > { %2108 = vst [vmem:[%s2594_s21 + $0x10] sm:$0xff] %v1960_v32   ;;  %2124 = vst [vmem:[%s2594_s21 + $0x90] sm:$0xff] %v2040_v33   ;;  %v1197_v39 = vadd.f32 %v2190_v37, %v2579_v35  ;;  %v1229_v40 = vadd.f32 %v2222_v38, %v2579_v35  ;;  %v1258_v49 = vmax.f32 %v1194_v34, 0.0 }
  0xf7   : > { %v764_v43 = vpop.f32.mrf.mxu0  ;;  %v892_v44 = vpop.f32.mrf.mxu1  ;;  %v1290_v50 = vmax.f32 %v1226_v36, 0.0 }
  0xf8   : > { %v1261_v45 = vmax.f32 %v1197_v39, 0.0  ;;  %v1293_v46 = vmax.f32 %v1229_v40, 0.0  ;;  %v1195_v47 = vadd.f32 %v2579_v35, %v764_v43  ;;  %v1227_v48 = vadd.f32 %v2579_v35, %v892_v44 }
  0xf9   : > { %v2193_v51 = vpop.f32.mrf.mxu0  ;;  %v2225_v52 = vpop.f32.mrf.mxu1 }
  0xfa   : > { %v1975_v53 = vpack.c.bf16 %v1261_v45, %v1260_v41  ;;  %v2055_v54 = vpack.c.bf16 %v1293_v46, %v1292_v42  ;;  %v1259_v55 = vmax.f32 %v1195_v47, 0.0  ;;  %v1291_v56 = vmax.f32 %v1227_v48, 0.0 }
  0xfb   : > { %v1200_v57 = vadd.f32 %v2193_v51, %v2579_v35  ;;  %v1232_v58 = vadd.f32 %v2225_v52, %v2579_v35  ;;  %v777_v59 = vpop.f32.mrf.mxu0  ;;  %v905_v60 = vpop.f32.mrf.mxu1 }
  0xfc   : > { %2111 = vst [vmem:[%s2594_s21 + $0x28] sm:$0xff] %v1975_v53   ;;  %2127 = vst [vmem:[%s2594_s21 + $0xa8] sm:$0xff] %v2055_v54   ;;  %v1970_v61 = vpack.c.bf16 %v1259_v55, %v1258_v49  ;;  %v2050_v62 = vpack.c.bf16 %v1291_v56, %v1290_v50  ;;  %v1198_v63 = vadd.f32 %v2579_v35, %v777_v59 }
  0xfd   : > { %v1230_v0 = vadd.f32 %v2579_v35, %v905_v60  ;;  %v2194_v1 = vpop.f32.mrf.mxu0  ;;  %v2226_v2 = vpop.f32.mrf.mxu1  ;;  %v1264_v5 = vmax.f32 %v1200_v57, 0.0  ;;  %v1296_v6 = vmax.f32 %v1232_v58, 0.0 }
  0xfe   : > { %2110 = vst [vmem:[%s2594_s21 + $0x20] sm:$0xff] %v1970_v61   ;;  %2126 = vst [vmem:[%s2594_s21 + $0xa0] sm:$0xff] %v2050_v62   ;;  %v1201_v3 = vadd.f32 %v2194_v1, %v2579_v35  ;;  %v1233_v4 = vadd.f32 %v2226_v2, %v2579_v35  ;;  %v1262_v13 = vmax.f32 %v1198_v63, 0.0 }
  0xff   : > { %v780_v7 = vpop.f32.mrf.mxu0  ;;  %v908_v8 = vpop.f32.mrf.mxu1  ;;  %v1294_v14 = vmax.f32 %v1230_v0, 0.0 }
 0x100   : > { %v1265_v9 = vmax.f32 %v1201_v3, 0.0  ;;  %v1297_v10 = vmax.f32 %v1233_v4, 0.0  ;;  %v1199_v11 = vadd.f32 %v2579_v35, %v780_v7  ;;  %v1231_v12 = vadd.f32 %v2579_v35, %v908_v8 }
 0x101   : > { %v2197_v15 = vpop.f32.mrf.mxu0  ;;  %v2229_v16 = vpop.f32.mrf.mxu1 }
 0x102   : > { %v1985_v17 = vpack.c.bf16 %v1265_v9, %v1264_v5  ;;  %v2065_v18 = vpack.c.bf16 %v1297_v10, %v1296_v6  ;;  %v1263_v19 = vmax.f32 %v1199_v11, 0.0  ;;  %v1295_v20 = vmax.f32 %v1231_v12, 0.0 }
 0x103   : > { %v1204_v21 = vadd.f32 %v2197_v15, %v2579_v35  ;;  %v1236_v22 = vadd.f32 %v2229_v16, %v2579_v35  ;;  %v793_v23 = vpop.f32.mrf.mxu0  ;;  %v921_v24 = vpop.f32.mrf.mxu1 }
 0x104   : > { %2113 = vst [vmem:[%s2594_s21 + $0x38] sm:$0xff] %v1985_v17   ;;  %2129 = vst [vmem:[%s2594_s21 + $0xb8] sm:$0xff] %v2065_v18   ;;  %v1980_v25 = vpack.c.bf16 %v1263_v19, %v1262_v13  ;;  %v2060_v26 = vpack.c.bf16 %v1295_v20, %v1294_v14  ;;  %v1202_v27 = vadd.f32 %v2579_v35, %v793_v23 }
 0x105   : > { %v1234_v28 = vadd.f32 %v2579_v35, %v921_v24  ;;  %v2198_v29 = vpop.f32.mrf.mxu0  ;;  %v2230_v30 = vpop.f32.mrf.mxu1  ;;  %v1268_v33 = vmax.f32 %v1204_v21, 0.0  ;;  %v1300_v34 = vmax.f32 %v1236_v22, 0.0 }
 0x106   : > { %2112 = vst [vmem:[%s2594_s21 + $0x30] sm:$0xff] %v1980_v25   ;;  %2128 = vst [vmem:[%s2594_s21 + $0xb0] sm:$0xff] %v2060_v26   ;;  %v1205_v31 = vadd.f32 %v2198_v29, %v2579_v35  ;;  %v1237_v32 = vadd.f32 %v2230_v30, %v2579_v35  ;;  %v1266_v42 = vmax.f32 %v1202_v27, 0.0 }
 0x107   : > { %v796_v36 = vpop.f32.mrf.mxu0  ;;  %v924_v37 = vpop.f32.mrf.mxu1  ;;  %v1298_v43 = vmax.f32 %v1234_v28, 0.0 }
 0x108   : > { %v1269_v38 = vmax.f32 %v1205_v31, 0.0  ;;  %v1301_v39 = vmax.f32 %v1237_v32, 0.0  ;;  %v1203_v40 = vadd.f32 %v2579_v35, %v796_v36  ;;  %v1235_v41 = vadd.f32 %v2579_v35, %v924_v37 }
 0x109   : > { %v2201_v44 = vpop.f32.mrf.mxu0  ;;  %v2233_v45 = vpop.f32.mrf.mxu1 }
 0x10a   : > { %v1995_v46 = vpack.c.bf16 %v1269_v38, %v1268_v33  ;;  %v2075_v47 = vpack.c.bf16 %v1301_v39, %v1300_v34  ;;  %v1267_v48 = vmax.f32 %v1203_v40, 0.0  ;;  %v1299_v49 = vmax.f32 %v1235_v41, 0.0 }
 0x10b   : > { %v1208_v50 = vadd.f32 %v2201_v44, %v2579_v35  ;;  %v1240_v51 = vadd.f32 %v2233_v45, %v2579_v35  ;;  %v809_v52 = vpop.f32.mrf.mxu0  ;;  %v937_v53 = vpop.f32.mrf.mxu1 }
 0x10c   : > { %2115 = vst [vmem:[%s2594_s21 + $0x48] sm:$0xff] %v1995_v46   ;;  %2131 = vst [vmem:[%s2594_s21 + $0xc8] sm:$0xff] %v2075_v47   ;;  %v1990_v54 = vpack.c.bf16 %v1267_v48, %v1266_v42  ;;  %v2070_v55 = vpack.c.bf16 %v1299_v49, %v1298_v43  ;;  %v1206_v56 = vadd.f32 %v2579_v35, %v809_v52 }
 0x10d   : > { %v1238_v57 = vadd.f32 %v2579_v35, %v937_v53  ;;  %v2202_v58 = vpop.f32.mrf.mxu0  ;;  %v2234_v59 = vpop.f32.mrf.mxu1  ;;  %v1272_v62 = vmax.f32 %v1208_v50, 0.0  ;;  %v1304_v63 = vmax.f32 %v1240_v51, 0.0 }
 0x10e   : > { %2114 = vst [vmem:[%s2594_s21 + $0x40] sm:$0xff] %v1990_v54   ;;  %2130 = vst [vmem:[%s2594_s21 + $0xc0] sm:$0xff] %v2070_v55   ;;  %v1209_v60 = vadd.f32 %v2202_v58, %v2579_v35  ;;  %v1241_v61 = vadd.f32 %v2234_v59, %v2579_v35  ;;  %v1270_v6 = vmax.f32 %v1206_v56, 0.0 }
 0x10f   : > { %v812_v0 = vpop.f32.mrf.mxu0  ;;  %v940_v1 = vpop.f32.mrf.mxu1  ;;  %v1302_v7 = vmax.f32 %v1238_v57, 0.0 }
 0x110   : > { %v1273_v2 = vmax.f32 %v1209_v60, 0.0  ;;  %v1305_v3 = vmax.f32 %v1241_v61, 0.0  ;;  %v1207_v4 = vadd.f32 %v2579_v35, %v812_v0  ;;  %v1239_v5 = vadd.f32 %v2579_v35, %v940_v1 }
 0x111   : > { %v2205_v8 = vpop.f32.mrf.mxu0  ;;  %v2237_v9 = vpop.f32.mrf.mxu1 }
 0x112   : > { %v2005_v10 = vpack.c.bf16 %v1273_v2, %v1272_v62  ;;  %v2085_v11 = vpack.c.bf16 %v1305_v3, %v1304_v63  ;;  %v1271_v12 = vmax.f32 %v1207_v4, 0.0  ;;  %v1303_v13 = vmax.f32 %v1239_v5, 0.0 }
 0x113   : > { %v1212_v14 = vadd.f32 %v2205_v8, %v2579_v35  ;;  %v1244_v15 = vadd.f32 %v2237_v9, %v2579_v35  ;;  %v825_v16 = vpop.f32.mrf.mxu0  ;;  %v953_v17 = vpop.f32.mrf.mxu1 }
 0x114   : > { %2117 = vst [vmem:[%s2594_s21 + $0x58] sm:$0xff] %v2005_v10   ;;  %2133 = vst [vmem:[%s2594_s21 + $0xd8] sm:$0xff] %v2085_v11   ;;  %v2000_v18 = vpack.c.bf16 %v1271_v12, %v1270_v6  ;;  %v2080_v19 = vpack.c.bf16 %v1303_v13, %v1302_v7  ;;  %v1210_v20 = vadd.f32 %v2579_v35, %v825_v16 }
 0x115   : > { %v1242_v21 = vadd.f32 %v2579_v35, %v953_v17  ;;  %v2206_v22 = vpop.f32.mrf.mxu0  ;;  %v2238_v23 = vpop.f32.mrf.mxu1  ;;  %v1276_v26 = vmax.f32 %v1212_v14, 0.0  ;;  %v1308_v27 = vmax.f32 %v1244_v15, 0.0 }
 0x116   : > { %2116 = vst [vmem:[%s2594_s21 + $0x50] sm:$0xff] %v2000_v18   ;;  %2132 = vst [vmem:[%s2594_s21 + $0xd0] sm:$0xff] %v2080_v19   ;;  %v1213_v24 = vadd.f32 %v2206_v22, %v2579_v35  ;;  %v1245_v25 = vadd.f32 %v2238_v23, %v2579_v35  ;;  %v1274_v34 = vmax.f32 %v1210_v20, 0.0 }
 0x117   : > { %v828_v28 = vpop.f32.mrf.mxu0  ;;  %v956_v29 = vpop.f32.mrf.mxu1  ;;  %v1306_v36 = vmax.f32 %v1242_v21, 0.0 }
 0x118   : > { %v1277_v30 = vmax.f32 %v1213_v24, 0.0  ;;  %v1309_v31 = vmax.f32 %v1245_v25, 0.0  ;;  %v1211_v32 = vadd.f32 %v2579_v35, %v828_v28  ;;  %v1243_v33 = vadd.f32 %v2579_v35, %v956_v29 }
 0x119   : > { %v2209_v37 = vpop.f32.mrf.mxu0  ;;  %v2241_v38 = vpop.f32.mrf.mxu1 }
 0x11a   : > { %v2015_v39 = vpack.c.bf16 %v1277_v30, %v1276_v26  ;;  %v2095_v40 = vpack.c.bf16 %v1309_v31, %v1308_v27  ;;  %v1275_v41 = vmax.f32 %v1211_v32, 0.0  ;;  %v1307_v42 = vmax.f32 %v1243_v33, 0.0 }
 0x11b   : > { %v1216_v43 = vadd.f32 %v2209_v37, %v2579_v35  ;;  %v1248_v44 = vadd.f32 %v2241_v38, %v2579_v35  ;;  %v841_v45 = vpop.f32.mrf.mxu0  ;;  %v969_v46 = vpop.f32.mrf.mxu1 }
 0x11c   : > { %2119 = vst [vmem:[%s2594_s21 + $0x68] sm:$0xff] %v2015_v39   ;;  %2135 = vst [vmem:[%s2594_s21 + $0xe8] sm:$0xff] %v2095_v40   ;;  %v2010_v47 = vpack.c.bf16 %v1275_v41, %v1274_v34  ;;  %v2090_v48 = vpack.c.bf16 %v1307_v42, %v1306_v36  ;;  %v1214_v49 = vadd.f32 %v2579_v35, %v841_v45 }
 0x11d   : > { %v1246_v50 = vadd.f32 %v2579_v35, %v969_v46  ;;  %v2210_v51 = vpop.f32.mrf.mxu0  ;;  %v2242_v52 = vpop.f32.mrf.mxu1  ;;  %v1280_v55 = vmax.f32 %v1216_v43, 0.0  ;;  %v1312_v56 = vmax.f32 %v1248_v44, 0.0 }
 0x11e   : > { %2118 = vst [vmem:[%s2594_s21 + $0x60] sm:$0xff] %v2010_v47   ;;  %2134 = vst [vmem:[%s2594_s21 + $0xe0] sm:$0xff] %v2090_v48   ;;  %v1217_v53 = vadd.f32 %v2210_v51, %v2579_v35  ;;  %v1249_v54 = vadd.f32 %v2242_v52, %v2579_v35  ;;  %v1278_v63 = vmax.f32 %v1214_v49, 0.0 }
 0x11f   : > { %v844_v57 = vpop.f32.mrf.mxu0  ;;  %v972_v58 = vpop.f32.mrf.mxu1  ;;  %v1310_v0 = vmax.f32 %v1246_v50, 0.0 }
 0x120   : > { %v1281_v59 = vmax.f32 %v1217_v53, 0.0  ;;  %v1313_v60 = vmax.f32 %v1249_v54, 0.0  ;;  %v1215_v61 = vadd.f32 %v2579_v35, %v844_v57  ;;  %v1247_v62 = vadd.f32 %v2579_v35, %v972_v58 }
 0x122   : > { %v2025_v1 = vpack.c.bf16 %v1281_v59, %v1280_v55  ;;  %v2105_v2 = vpack.c.bf16 %v1313_v60, %v1312_v56  ;;  %v1279_v3 = vmax.f32 %v1215_v61, 0.0  ;;  %v1311_v4 = vmax.f32 %v1247_v62, 0.0 }
 0x124   : > { %2121 = vst [vmem:[%s2594_s21 + $0x78] sm:$0xff] %v2025_v1   ;;  %2137 = vst [vmem:[%s2594_s21 + $0xf8] sm:$0xff] %v2105_v2   ;;  %v2020_v35 = vpack.c.bf16 %v1279_v3, %v1278_v63  ;;  %v2100_v5 = vpack.c.bf16 %v1311_v4, %v1310_v0 }
 0x126   : > { %2120 = vst [vmem:[%s2594_s21 + $0x70] sm:$0xff] %v2020_v35   ;;  %2136 = vst [vmem:[%s2594_s21 + $0xf0] sm:$0xff] %v2100_v5  }
 0x127   : > { %2354 = shalt.err (!%p2351_p5)
}
 0x128   : > { %s2355_s7 = scalar_lea.hbm %s2683_s29, 4096  ;;  %s2359_s10 = scalar_lea.hbm %s2741_s3, 49152 }
 0x129   : > { %p2356_p6 = scmp.ne.s32.totalorder %s2683_s29, %s2355_s7  ;;  %p2360_p10 = scmp.lt.s32.totalorder %s2683_s29, %s2741_s3 }
 0x12a   : > { %p2361_p11 = scmp.lt.s32.totalorder %s2359_s10, %s2355_s7 }
 0x12b   : > { %p2357_p7 = pnand %p2356_p6, %p2482_p4 }
 0x12c   : > { %p2362_p12 = por %p2361_p11, %p2360_p10 }
 0x12d   : > { %p2358_p9 = pneg %p2357_p7 }
 0x12f   : > { %p2363_p13 = pnand %p2362_p12, %p2358_p9 }
 0x131   : > { %2366 = shalt.err (!%p2363_p13)
}
 0x132   : > { %s2420_s19 = smov 64   ;;  %s2421_s21 = smov 4  }
 0x133   : > { %2249 = dma.vmem_to_hbm [thread:$0]  (%p2482_p4), %s2685_s26, 4096, %s2683_s29, %s2693_s15, %s2420_s19, %s2420_s19, %s2421_s21  }
 0x134 PF: > { %p2255_p0 = scmp.ge.s32.totalorder %s2417_s17, 2  ;;  %s1663_s23 = sand.u32 1, %s2397_s12  }
 0x135   : > { %s1664_s27 = scalar_lea.sflag [#allocation4], %s1663_s23 }
 0x136   : > { %p2252_p1 = pnand %p2255_p0, %p2489_p8 }
 0x138   : > { %p2253_p2 = pneg %p2252_p1 }
 0x13a   : > { %2392 = dma.done.wait (%p2253_p2), %s1664_s27, 4096  }
 0x13b   : > { %2394 = vsyncadd (%p2253_p2), %s1664_s27, 4294963200  ;;  %s16_s17 = sadd.s32 1, %s2417_s17   ;;  %s2744_s12 = smov %s2401_s13 }
 0x13c   : > { %p13_p3 = scmp.ge.s32.totalorder %s16_s17, 14   ;;  %s2745_s13 = smov %s2405_s14 }
 0x13d   : > { %s2746_s14 = smov %s2495_s25  ;;  %s2747_s15 = smov %s2413_s16 }
 0x13e   : > { %s2748_s16 = smov %s2750_s20  ;;  %15 = sbr.rel (!%p13_p3) target bundleno = 4 (0x4), region = 78 }
 0x143   :  { %1669 = vsyncpa [#allocation4], 1 }
 0x144   :  { %1671 = vsyncpa [#allocation4 + $0x1], 1 }

</bundles_post_ra>
